<compile_context>
chip_gen: v5e
topology: v5e:2x2
jax: 0.10.0
libtpu: 0.0.40
codegen_flags: <defaults>
</compile_context>

<pallas_src>
import jax
import jax.numpy as jnp
from jax import lax
from jax.experimental import pallas as pl
from jax.experimental.pallas import tpu as pltpu

EPS = 1e-5
_MAX_ROWS = 256              # whole-image slab cap (see TODO above)
_AFFINE_ROW_TILE = 512       # max rows per step for the standalone affine+ReLU pass
_VMEM_LIMIT = 32 * 1024 * 1024   # explicit, well under v7x's 64 MiB VMEM


def _pick_row_tile(rows, cap):
    """Largest multiple-of-8 divisor of `rows` that is <= cap."""
    t = max(min(rows, cap) // 8 * 8, 8)
    while t > 8 and rows % t != 0:
        t -= 8
    return t


def _make_conv_kernel(H, W, Cin, Cout, fuse_input_affine, compute_dtype):
    """Conv2d(3x3, pad=1) on a whole-image slab + per-lane partial BN statistics.

    If `fuse_input_affine`, the *previous* block's BatchNorm affine + ReLU is
    applied in registers to the loaded (pre-BN) slab before convolving.
    """
    K = W * Cin                 # contraction size of each banded matmul
    WC_out = W * Cout

    def body(x_ref, w_ref, scale_ref, shift_ref, y_ref, stats_ref, pbuf):
        x = x_ref[...]                                         # (H, W*Cin)
        if fuse_input_affine:
            x = jnp.maximum(
                x.astype(jnp.float32) * scale_ref[...] + shift_ref[...], 0.0)

        # Row-haloed slab: rows 0 and H+1 are this image's zero padding rows.
        zrow = jnp.zeros((1, K), compute_dtype)
        pbuf[0:1, :] = zrow
        pbuf[H + 1:H + 2, :] = zrow
        pbuf[1:H + 1, :] = x.astype(compute_dtype)

        # 3 accumulated shift-and-matmul products, f32 accumulation on the MXU.
        acc = jnp.zeros((H, WC_out), jnp.float32)
        for kh in range(3):                                    # static unroll
            acc = acc + jnp.dot(pbuf[kh:kh + H, :],
                                w_ref[kh * K:(kh + 1) * K, :],
                                preferred_element_type=jnp.float32)

        # Per-lane partial BN statistics (lane-dense, width W*Cout); the tiny fold
        # to per-channel sums runs in XLA.  TODO(synk): compensated / shifted sums
        # if N*H*W per channel grows large (E[x^2]-E[x]^2 cancellation).
        ssum = jnp.sum(acc, axis=0, keepdims=True)             # (1, W*Cout)
        ssq = jnp.sum(acc * acc, axis=0, keepdims=True)        # (1, W*Cout)
        stats_ref[...] = jnp.concatenate([ssum, ssq], axis=0)[None]

        y_ref[...] = acc.astype(y_ref.dtype)                   # lane-dense store

    if fuse_input_affine:
        return body

    def body_plain(x_ref, w_ref, y_ref, stats_ref, pbuf):
        return body(x_ref, w_ref, None, None, y_ref, stats_ref, pbuf)
    return body_plain


def _conv_bn_stats_pass(x_flat, w_band, scale_row, shift_row, *,
                        N, H, W, Cin, Cout, compute_dtype):
    """One conv (+ partial BN stats) pass: grid over images, whole-image slabs."""
    WC_out = W * Cout
    fuse = scale_row is not None
    kernel = _make_conv_kernel(H, W, Cin, Cout, fuse, compute_dtype)

    in_specs = [
        pl.BlockSpec((H, W * Cin), lambda n: (n, 0)),            # image slab
        pl.BlockSpec((3 * W * Cin, WC_out), lambda n: (0, 0)),   # banded weights
    ]
    args = [x_flat, w_band]
    if fuse:
        in_specs += [pl.BlockSpec((1, W * Cin), lambda n: (0, 0)),
                     pl.BlockSpec((1, W * Cin), lambda n: (0, 0))]
        args += [scale_row, shift_row]

    y_pre, stats = pl.pallas_call(
        kernel,
        out_shape=(jax.ShapeDtypeStruct((N * H, WC_out), compute_dtype),
                   jax.ShapeDtypeStruct((N, 2, WC_out), jnp.float32)),
        grid=(N,),
        in_specs=in_specs,
        out_specs=(pl.BlockSpec((H, WC_out), lambda n: (n, 0)),
                   pl.BlockSpec((1, 2, WC_out), lambda n: (n, 0, 0))),
        scratch_shapes=[pltpu.VMEM((H + 2, W * Cin), compute_dtype)],
        compiler_params=pltpu.CompilerParams(
            dimension_semantics=("parallel",),
            vmem_limit_bytes=_VMEM_LIMIT),
    )(*args)
    return y_pre, stats


def _finalize_bn(stats, gamma, beta, N, H, W, Cout):
    """Fold per-lane partial sums into per-channel BN scale/shift rows (XLA)."""
    s = jnp.sum(stats.reshape(N, 2, W, Cout), axis=(0, 2))      # (2, Cout)
    cnt = jnp.float32(N * H * W)
    mean = s[0] / cnt
    var = s[1] / cnt - mean * mean                               # biased (train mode)
    scale = gamma * lax.rsqrt(var + EPS)
    shift = beta - mean * scale
    scale_row = jnp.tile(scale, W).reshape(1, W * Cout)          # channel-fastest
    shift_row = jnp.tile(shift, W).reshape(1, W * Cout)
    return scale_row, shift_row


def _affine_relu_kernel(y_ref, scale_ref, shift_ref, o_ref):
    """BN pass 2 (y*scale + shift) fused with ReLU; f32 math, lane-dense blocks."""
    o_ref[...] = jnp.maximum(
        y_ref[...].astype(jnp.float32) * scale_ref[...] + shift_ref[...], 0.0
    ).astype(o_ref.dtype)


def _affine_relu_pass(y_pre, scale_row, shift_row, out_dtype):
    R, WC = y_pre.shape
    TR = _pick_row_tile(R, _AFFINE_ROW_TILE)                     # big blocks
    return pl.pallas_call(
        _affine_relu_kernel,
        out_shape=jax.ShapeDtypeStruct((R, WC), out_dtype),
        grid=(R // TR,),
        in_specs=[pl.BlockSpec((TR, WC), lambda i: (i, 0)),
                  pl.BlockSpec((1, WC), lambda i: (0, 0)),
                  pl.BlockSpec((1, WC), lambda i: (0, 0))],
        out_specs=pl.BlockSpec((TR, WC), lambda i: (i, 0)),
        compiler_params=pltpu.CompilerParams(
            dimension_semantics=("parallel",),
            vmem_limit_bytes=_VMEM_LIMIT),
    )(y_pre, scale_row, shift_row)


@jax.jit
def double_conv(x_nchw, params):
    """DoubleConv forward.  Input/output NCHW; params from prepare_params()."""
    wb1, g1, be1, wb2, g2, be2 = params
    cdt = wb1.dtype                                   # storage / matmul dtype
    N, Cin, H, W = x_nchw.shape
    C1 = wb1.shape[1] // W
    C2 = wb2.shape[1] // W
    assert H % 8 == 0 and H <= _MAX_ROWS, "whole-image row slabs only (see TODO)"

    # NCHW -> lane-dense (N*H, W*Cin), cast once to the storage dtype.
    x_flat = jnp.transpose(x_nchw, (0, 2, 3, 1)).reshape(N * H, W * Cin).astype(cdt)

    # Block 1: conv + partial stats (its affine+ReLU is fused into block 2).
    y1_pre, st1 = _conv_bn_stats_pass(x_flat, wb1, None, None,
                                      N=N, H=H, W=W, Cin=Cin, Cout=C1,
                                      compute_dtype=cdt)
    sc1, sh1 = _finalize_bn(st1, g1, be1, N, H, W, C1)

    # Block 2: affine1+ReLU applied to the loaded slab, then conv2 + stats.
    y2_pre, st2 = _conv_bn_stats_pass(y1_pre, wb2, sc1, sh1,
                                      N=N, H=H, W=W, Cin=C1, Cout=C2,
                                      compute_dtype=cdt)
    sc2, sh2 = _finalize_bn(st2, g2, be2, N, H, W, C2)

    # Final affine + ReLU (needs global stats, cannot fuse further).
    y = _affine_relu_pass(y2_pre, sc2, sh2, jnp.float32)         # (N*H, W*C2) f32
    return jnp.transpose(y.reshape(N, H, W, C2), (0, 3, 1, 2))   # NHWC -> NCHW


def init_params(key, in_channels, out_channels):
    """Deterministic parameter init, PyTorch-native layouts (OIHW conv weights)."""
    k1, k2, k3, k4 = jax.random.split(key, 4)
    w1 = jax.random.normal(k1, (out_channels, in_channels, 3, 3), jnp.float32) * 0.1
    b1 = jax.random.normal(k2, (out_channels,), jnp.float32) * 0.1
    w2 = jax.random.normal(k3, (out_channels, out_channels, 3, 3), jnp.float32) * 0.1
    b2 = jax.random.normal(k4, (out_channels,), jnp.float32) * 0.1
    g1 = jnp.ones((out_channels,), jnp.float32)     # BN weight init = 1
    be1 = jnp.zeros((out_channels,), jnp.float32)   # BN bias init = 0
    g2 = jnp.ones((out_channels,), jnp.float32)
    be2 = jnp.zeros((out_channels,), jnp.float32)
    return (w1, b1, g1, be1, w2, b2, g2, be2)


def prepare_params(raw_params, spatial_width, compute_dtype=jnp.bfloat16):
    """One-time layout conversion (hoisted out of the forward pass).

    OIHW weights -> banded shift-and-matmul matrices of shape (3*W*Cin, W*Cout):
        band[kh*W*Cin + wi*Cin + ci, c*Cout + co] = w[co, ci, kh, wi - c + 1]
    for |wi - c| <= 1 (zero otherwise); column zero-padding is thereby encoded in
    the band structure.  The conv biases are dropped (cancelled by train-mode BN).
    """
    (w1, b1, g1, be1, w2, b2, g2, be2) = raw_params
    del b1, b2                                       # forward no-ops under train-BN
    W = spatial_width

    def band(w_oihw):
        co, ci, kh_, kw_ = w_oihw.shape
        assert (kh_, kw_) == (3, 3)
        mats = []
        for kh in range(3):
            a = jnp.zeros((W * ci, W * co), jnp.float32)
            for kw in range(3):
                shift = jnp.eye(W, k=1 - kw, dtype=jnp.float32)   # wi = c + kw - 1
                a = a + jnp.kron(shift, jnp.transpose(w_oihw[:, :, kh, kw]))
            mats.append(a)
        return jnp.concatenate(mats, axis=0).astype(compute_dtype)

    f32 = jnp.float32
    return (band(w1), g1.astype(f32), be1.astype(f32),
            band(w2), g2.astype(f32), be2.astype(f32))


def _reference_double_conv(x_nchw, raw_params):
    """Pure-JAX reference (f32 lax conv + train-mode BN + ReLU) for validation."""
    (w1, b1, g1, be1, w2, b2, g2, be2) = raw_params

    def block(x, w, b, g, be):
        y = lax.conv_general_dilated(
            x, w, window_strides=(1, 1), padding=((1, 1), (1, 1)),
            dimension_numbers=("NCHW", "OIHW", "NCHW"),
            precision=lax.Precision.HIGHEST)
        y = y + b[None, :, None, None]
        mean = jnp.mean(y, axis=(0, 2, 3), keepdims=True)
        var = jnp.mean((y - mean) ** 2, axis=(0, 2, 3), keepdims=True)
        y = (y - mean) * lax.rsqrt(var + EPS)
        y = y * g[None, :, None, None] + be[None, :, None, None]
        return jnp.maximum(y, 0.0)

    y = block(x_nchw.astype(jnp.float32), w1, b1, g1, be1)
    y = block(y, w2, b2, g2, be2)
    return y


if __name__ == "__main__":
    key = jax.random.PRNGKey(0)
    kx, kp = jax.random.split(key)

    N, C_in, C_out, H, W = 2, 4, 8, 16, 16
    x = jax.random.normal(kx, (N, C_in, H, W), jnp.float32)   # NCHW like PyTorch
    raw = init_params(kp, C_in, C_out)
    ref = jax.block_until_ready(_reference_double_conv(x, raw))

    # Exact path: f32 storage + matmul inputs — must match the f32 reference.
    out_f32 = jax.block_until_ready(
        double_conv(x, prepare_params(raw, W, jnp.float32)))
    assert out_f32.shape == (N, C_out, H, W), out_f32.shape
    err = float(jnp.max(jnp.abs(out_f32 - ref)))
    assert err < 1e-3, f"f32 path mismatch vs reference: max abs err {err}"

    # Default fast path: bf16 activations in HBM + bf16 MXU inputs, f32
    # accumulation and f32 BN math.  Loose sanity bound (bf16 rounding passes
    # through two batch-norms).
    out_bf16 = jax.block_until_ready(double_conv(x, prepare_params(raw, W)))
    err_bf = float(jnp.max(jnp.abs(out_bf16 - ref)))
    assert err_bf < 2e-1, f"bf16 path mismatch vs reference: max abs err {err_bf}"

    print("KERNEL_OK")
</pallas_src>

<mosaic_0001>
module attributes {stable_mosaic.version = 11 : i64} {
  func.func @body_plain(%arg0: i32, %arg1: memref<16x64xf32, #tpu.memory_space<vmem>>, %arg2: memref<192x128xf32, #tpu.memory_space<vmem>>, %arg3: memref<16x128xf32, #tpu.memory_space<vmem>>, %arg4: memref<1x2x128xf32, #tpu.memory_space<vmem>>, %arg5: memref<18x64xf32, #tpu.memory_space<vmem>>) attributes {dimension_semantics = [#tpu.dimension_semantics<parallel>], iteration_bounds = array<i64: 2>, scalar_prefetch = 0 : i64, scratch_operands = 1 : i64, tpu.core_type = #tpu.core_type<tc>, window_params = [{transform_indices = @transform_0, window_bounds = array<i64: 16, 64>}, {pipeline_mode = #tpu.pipeline_mode<synchronous>, transform_indices = @transform_1, window_bounds = array<i64: 192, 128>}, {transform_indices = @transform_2, window_bounds = array<i64: 16, 128>}, {transform_indices = @transform_3, window_bounds = array<i64: 1, 2, 128>}]} {
    %c0 = arith.constant 0 : index
    %c0_0 = arith.constant 0 : index
    %0 = vector.load %arg1[%c0, %c0_0] : memref<16x64xf32, #tpu.memory_space<vmem>>, vector<16x64xf32>
    %cst = arith.constant 0.000000e+00 : f32
    %1 = vector.broadcast %cst : f32 to vector<1x64xf32>
    %c0_1 = arith.constant 0 : index
    %c0_2 = arith.constant 0 : index
    %2 = vector.load %arg5[%c0_1, %c0_2] : memref<18x64xf32, #tpu.memory_space<vmem>>, vector<1x64xf32>
    tpu.vector_store %arg5[%c0_1, %c0_2], %1 {strides = array<i32>} : memref<18x64xf32, #tpu.memory_space<vmem>>, vector<1x64xf32>,
    %c17 = arith.constant 17 : index
    %c0_3 = arith.constant 0 : index
    %3 = vector.load %arg5[%c17, %c0_3] : memref<18x64xf32, #tpu.memory_space<vmem>>, vector<1x64xf32>
    tpu.vector_store %arg5[%c17, %c0_3], %1 {strides = array<i32>} : memref<18x64xf32, #tpu.memory_space<vmem>>, vector<1x64xf32>,
    %c1 = arith.constant 1 : index
    %c0_4 = arith.constant 0 : index
    %4 = vector.load %arg5[%c1, %c0_4] : memref<18x64xf32, #tpu.memory_space<vmem>>, vector<16x64xf32>
    tpu.vector_store %arg5[%c1, %c0_4], %0 {strides = array<i32>} : memref<18x64xf32, #tpu.memory_space<vmem>>, vector<16x64xf32>,
    %cst_5 = arith.constant 0.000000e+00 : f32
    %5 = vector.broadcast %cst_5 : f32 to vector<16x128xf32>
    %c0_6 = arith.constant 0 : index
    %c0_7 = arith.constant 0 : index
    %6 = vector.load %arg5[%c0_6, %c0_7] : memref<18x64xf32, #tpu.memory_space<vmem>>, vector<16x64xf32>
    %c0_8 = arith.constant 0 : index
    %c0_9 = arith.constant 0 : index
    %7 = vector.load %arg2[%c0_8, %c0_9] : memref<192x128xf32, #tpu.memory_space<vmem>>, vector<64x128xf32>
    %cst_10 = arith.constant dense<0.000000e+00> : vector<16x128xf32>
    %8 = tpu.matmul %6, %7, %cst_10 {dimension_numbers = #tpu.dot_dimension_numbers<[1], [0], [0], [1], [0, 0, 1, 1], [], []>} : vector<16x64xf32>, vector<64x128xf32>, vector<16x128xf32> -> vector<16x128xf32>
    %9 = arith.addf %5, %8 : vector<16x128xf32>
    %c1_11 = arith.constant 1 : index
    %c0_12 = arith.constant 0 : index
    %10 = vector.load %arg5[%c1_11, %c0_12] : memref<18x64xf32, #tpu.memory_space<vmem>>, vector<16x64xf32>
    %c64 = arith.constant 64 : index
    %c0_13 = arith.constant 0 : index
    %11 = vector.load %arg2[%c64, %c0_13] : memref<192x128xf32, #tpu.memory_space<vmem>>, vector<64x128xf32>
    %cst_14 = arith.constant dense<0.000000e+00> : vector<16x128xf32>
    %12 = tpu.matmul %10, %11, %cst_14 {dimension_numbers = #tpu.dot_dimension_numbers<[1], [0], [0], [1], [0, 0, 1, 1], [], []>} : vector<16x64xf32>, vector<64x128xf32>, vector<16x128xf32> -> vector<16x128xf32>
    %13 = arith.addf %9, %12 : vector<16x128xf32>
    %c2 = arith.constant 2 : index
    %c0_15 = arith.constant 0 : index
    %14 = vector.load %arg5[%c2, %c0_15] : memref<18x64xf32, #tpu.memory_space<vmem>>, vector<16x64xf32>
    %c128 = arith.constant 128 : index
    %c0_16 = arith.constant 0 : index
    %15 = vector.load %arg2[%c128, %c0_16] : memref<192x128xf32, #tpu.memory_space<vmem>>, vector<64x128xf32>
    %cst_17 = arith.constant dense<0.000000e+00> : vector<16x128xf32>
    %16 = tpu.matmul %14, %15, %cst_17 {dimension_numbers = #tpu.dot_dimension_numbers<[1], [0], [0], [1], [0, 0, 1, 1], [], []>} : vector<16x64xf32>, vector<64x128xf32>, vector<16x128xf32> -> vector<16x128xf32>
    %17 = arith.addf %13, %16 : vector<16x128xf32>
    %cst_18 = arith.constant dense<0.000000e+00> : vector<128xf32>
    %18 = vector.multi_reduction <add>, %17, %cst_18 [0] : vector<16x128xf32> to vector<128xf32>
    %19 = vector.shape_cast %18 : vector<128xf32> to vector<1x128xf32>
    %20 = arith.mulf %17, %17 : vector<16x128xf32>
    %cst_19 = arith.constant dense<0.000000e+00> : vector<128xf32>
    %21 = vector.multi_reduction <add>, %20, %cst_19 [0] : vector<16x128xf32> to vector<128xf32>
    %22 = vector.shape_cast %21 : vector<128xf32> to vector<1x128xf32>
    %23 = tpu.concatenate %19, %22 in 0 : vector<1x128xf32>, vector<1x128xf32> -> vector<2x128xf32>
    %24 = vector.shape_cast %23 : vector<2x128xf32> to vector<1x2x128xf32>
    %c0_20 = arith.constant 0 : index
    %c0_21 = arith.constant 0 : index
    %c0_22 = arith.constant 0 : index
    %25 = vector.load %arg4[%c0_20, %c0_21, %c0_22] : memref<1x2x128xf32, #tpu.memory_space<vmem>>, vector<1x2x128xf32>
    tpu.vector_store %arg4[%c0_20, %c0_21, %c0_22], %24 {strides = array<i32>} : memref<1x2x128xf32, #tpu.memory_space<vmem>>, vector<1x2x128xf32>,
    %c0_23 = arith.constant 0 : index
    %c0_24 = arith.constant 0 : index
    %26 = vector.load %arg3[%c0_23, %c0_24] : memref<16x128xf32, #tpu.memory_space<vmem>>, vector<16x128xf32>
    tpu.vector_store %arg3[%c0_23, %c0_24], %17 {strides = array<i32>} : memref<16x128xf32, #tpu.memory_space<vmem>>, vector<16x128xf32>,
    return
  }
  func.func @transform_0(%arg0: i32) -> (i32, i32) {
    %c0_i32 = arith.constant 0 : i32
    %c0_i32_0 = arith.constant 0 : i32
    return %arg0, %c0_i32 : i32, i32
  }
  func.func @transform_1(%arg0: i32) -> (i32, i32) {
    %c0_i32 = arith.constant 0 : i32
    %c0_i32_0 = arith.constant 0 : i32
    %c0_i32_1 = arith.constant 0 : i32
    return %c0_i32, %c0_i32_0 : i32, i32
  }
  func.func @transform_2(%arg0: i32) -> (i32, i32) {
    %c0_i32 = arith.constant 0 : i32
    %c0_i32_0 = arith.constant 0 : i32
    return %arg0, %c0_i32 : i32, i32
  }
  func.func @transform_3(%arg0: i32) -> (i32, i32, i32) {
    %c0_i32 = arith.constant 0 : i32
    %c0_i32_0 = arith.constant 0 : i32
    %c0_i32_1 = arith.constant 0 : i32
    return %arg0, %c0_i32, %c0_i32_0 : i32, i32, i32
  }
}

module attributes {stable_mosaic.version = 11 : i64} {
  func.func @body(%arg0: i32, %arg1: memref<16x128xf32, #tpu.memory_space<vmem>>, %arg2: memref<384x128xf32, #tpu.memory_space<vmem>>, %arg3: memref<1x128xf32, #tpu.memory_space<vmem>>, %arg4: memref<1x128xf32, #tpu.memory_space<vmem>>, %arg5: memref<16x128xf32, #tpu.memory_space<vmem>>, %arg6: memref<1x2x128xf32, #tpu.memory_space<vmem>>, %arg7: memref<18x128xf32, #tpu.memory_space<vmem>>) attributes {dimension_semantics = [#tpu.dimension_semantics<parallel>], iteration_bounds = array<i64: 2>, scalar_prefetch = 0 : i64, scratch_operands = 1 : i64, tpu.core_type = #tpu.core_type<tc>, window_params = [{transform_indices = @transform_0, window_bounds = array<i64: 16, 128>}, {pipeline_mode = #tpu.pipeline_mode<synchronous>, transform_indices = @transform_1, window_bounds = array<i64: 384, 128>}, {pipeline_mode = #tpu.pipeline_mode<synchronous>, transform_indices = @transform_2, window_bounds = array<i64: 1, 128>}, {pipeline_mode = #tpu.pipeline_mode<synchronous>, transform_indices = @transform_3, window_bounds = array<i64: 1, 128>}, {transform_indices = @transform_4, window_bounds = array<i64: 16, 128>}, {transform_indices = @transform_5, window_bounds = array<i64: 1, 2, 128>}]} {
    %c0 = arith.constant 0 : index
    %c0_0 = arith.constant 0 : index
    %0 = vector.load %arg1[%c0, %c0_0] : memref<16x128xf32, #tpu.memory_space<vmem>>, vector<16x128xf32>
    %c0_1 = arith.constant 0 : index
    %c0_2 = arith.constant 0 : index
    %1 = vector.load %arg3[%c0_1, %c0_2] : memref<1x128xf32, #tpu.memory_space<vmem>>, vector<1x128xf32>
    %2 = vector.broadcast %1 : vector<1x128xf32> to vector<16x128xf32>
    %3 = arith.mulf %0, %2 : vector<16x128xf32>
    %c0_3 = arith.constant 0 : index
    %c0_4 = arith.constant 0 : index
    %4 = vector.load %arg4[%c0_3, %c0_4] : memref<1x128xf32, #tpu.memory_space<vmem>>, vector<1x128xf32>
    %5 = vector.broadcast %4 : vector<1x128xf32> to vector<16x128xf32>
    %6 = arith.addf %3, %5 : vector<16x128xf32>
    %cst = arith.constant 0.000000e+00 : f32
    %7 = vector.broadcast %cst : f32 to vector<16x128xf32>
    %8 = arith.maximumf %6, %7 : vector<16x128xf32>
    %cst_5 = arith.constant 0.000000e+00 : f32
    %9 = vector.broadcast %cst_5 : f32 to vector<1x128xf32>
    %c0_6 = arith.constant 0 : index
    %c0_7 = arith.constant 0 : index
    %10 = vector.load %arg7[%c0_6, %c0_7] : memref<18x128xf32, #tpu.memory_space<vmem>>, vector<1x128xf32>
    tpu.vector_store %arg7[%c0_6, %c0_7], %9 {strides = array<i32>} : memref<18x128xf32, #tpu.memory_space<vmem>>, vector<1x128xf32>,
    %c17 = arith.constant 17 : index
    %c0_8 = arith.constant 0 : index
    %11 = vector.load %arg7[%c17, %c0_8] : memref<18x128xf32, #tpu.memory_space<vmem>>, vector<1x128xf32>
    tpu.vector_store %arg7[%c17, %c0_8], %9 {strides = array<i32>} : memref<18x128xf32, #tpu.memory_space<vmem>>, vector<1x128xf32>,
    %c1 = arith.constant 1 : index
    %c0_9 = arith.constant 0 : index
    %12 = vector.load %arg7[%c1, %c0_9] : memref<18x128xf32, #tpu.memory_space<vmem>>, vector<16x128xf32>
    tpu.vector_store %arg7[%c1, %c0_9], %8 {strides = array<i32>} : memref<18x128xf32, #tpu.memory_space<vmem>>, vector<16x128xf32>,
    %cst_10 = arith.constant 0.000000e+00 : f32
    %13 = vector.broadcast %cst_10 : f32 to vector<16x128xf32>
    %c0_11 = arith.constant 0 : index
    %c0_12 = arith.constant 0 : index
    %14 = vector.load %arg7[%c0_11, %c0_12] : memref<18x128xf32, #tpu.memory_space<vmem>>, vector<16x128xf32>
    %c0_13 = arith.constant 0 : index
    %c0_14 = arith.constant 0 : index
    %15 = vector.load %arg2[%c0_13, %c0_14] : memref<384x128xf32, #tpu.memory_space<vmem>>, vector<128x128xf32>
    %cst_15 = arith.constant dense<0.000000e+00> : vector<16x128xf32>
    %16 = tpu.matmul %14, %15, %cst_15 {dimension_numbers = #tpu.dot_dimension_numbers<[1], [0], [0], [1], [0, 0, 1, 1], [], []>} : vector<16x128xf32>, vector<128x128xf32>, vector<16x128xf32> -> vector<16x128xf32>
    %17 = arith.addf %13, %16 : vector<16x128xf32>
    %c1_16 = arith.constant 1 : index
    %c0_17 = arith.constant 0 : index
    %18 = vector.load %arg7[%c1_16, %c0_17] : memref<18x128xf32, #tpu.memory_space<vmem>>, vector<16x128xf32>
    %c128 = arith.constant 128 : index
    %c0_18 = arith.constant 0 : index
    %19 = vector.load %arg2[%c128, %c0_18] : memref<384x128xf32, #tpu.memory_space<vmem>>, vector<128x128xf32>
    %cst_19 = arith.constant dense<0.000000e+00> : vector<16x128xf32>
    %20 = tpu.matmul %18, %19, %cst_19 {dimension_numbers = #tpu.dot_dimension_numbers<[1], [0], [0], [1], [0, 0, 1, 1], [], []>} : vector<16x128xf32>, vector<128x128xf32>, vector<16x128xf32> -> vector<16x128xf32>
    %21 = arith.addf %17, %20 : vector<16x128xf32>
    %c2 = arith.constant 2 : index
    %c0_20 = arith.constant 0 : index
    %22 = vector.load %arg7[%c2, %c0_20] : memref<18x128xf32, #tpu.memory_space<vmem>>, vector<16x128xf32>
    %c256 = arith.constant 256 : index
    %c0_21 = arith.constant 0 : index
    %23 = vector.load %arg2[%c256, %c0_21] : memref<384x128xf32, #tpu.memory_space<vmem>>, vector<128x128xf32>
    %cst_22 = arith.constant dense<0.000000e+00> : vector<16x128xf32>
    %24 = tpu.matmul %22, %23, %cst_22 {dimension_numbers = #tpu.dot_dimension_numbers<[1], [0], [0], [1], [0, 0, 1, 1], [], []>} : vector<16x128xf32>, vector<128x128xf32>, vector<16x128xf32> -> vector<16x128xf32>
    %25 = arith.addf %21, %24 : vector<16x128xf32>
    %cst_23 = arith.constant dense<0.000000e+00> : vector<128xf32>
    %26 = vector.multi_reduction <add>, %25, %cst_23 [0] : vector<16x128xf32> to vector<128xf32>
    %27 = vector.shape_cast %26 : vector<128xf32> to vector<1x128xf32>
    %28 = arith.mulf %25, %25 : vector<16x128xf32>
    %cst_24 = arith.constant dense<0.000000e+00> : vector<128xf32>
    %29 = vector.multi_reduction <add>, %28, %cst_24 [0] : vector<16x128xf32> to vector<128xf32>
    %30 = vector.shape_cast %29 : vector<128xf32> to vector<1x128xf32>
    %31 = tpu.concatenate %27, %30 in 0 : vector<1x128xf32>, vector<1x128xf32> -> vector<2x128xf32>
    %32 = vector.shape_cast %31 : vector<2x128xf32> to vector<1x2x128xf32>
    %c0_25 = arith.constant 0 : index
    %c0_26 = arith.constant 0 : index
    %c0_27 = arith.constant 0 : index
    %33 = vector.load %arg6[%c0_25, %c0_26, %c0_27] : memref<1x2x128xf32, #tpu.memory_space<vmem>>, vector<1x2x128xf32>
    tpu.vector_store %arg6[%c0_25, %c0_26, %c0_27], %32 {strides = array<i32>} : memref<1x2x128xf32, #tpu.memory_space<vmem>>, vector<1x2x128xf32>,
    %c0_28 = arith.constant 0 : index
    %c0_29 = arith.constant 0 : index
    %34 = vector.load %arg5[%c0_28, %c0_29] : memref<16x128xf32, #tpu.memory_space<vmem>>, vector<16x128xf32>
    tpu.vector_store %arg5[%c0_28, %c0_29], %25 {strides = array<i32>} : memref<16x128xf32, #tpu.memory_space<vmem>>, vector<16x128xf32>,
    return
  }
  func.func @transform_0(%arg0: i32) -> (i32, i32) {
    %c0_i32 = arith.constant 0 : i32
    %c0_i32_0 = arith.constant 0 : i32
    return %arg0, %c0_i32 : i32, i32
  }
  func.func @transform_1(%arg0: i32) -> (i32, i32) {
    %c0_i32 = arith.constant 0 : i32
    %c0_i32_0 = arith.constant 0 : i32
    %c0_i32_1 = arith.constant 0 : i32
    return %c0_i32, %c0_i32_0 : i32, i32
  }
  func.func @transform_2(%arg0: i32) -> (i32, i32) {
    %c0_i32 = arith.constant 0 : i32
    %c0_i32_0 = arith.constant 0 : i32
    %c0_i32_1 = arith.constant 0 : i32
    return %c0_i32, %c0_i32_0 : i32, i32
  }
  func.func @transform_3(%arg0: i32) -> (i32, i32) {
    %c0_i32 = arith.constant 0 : i32
    %c0_i32_0 = arith.constant 0 : i32
    %c0_i32_1 = arith.constant 0 : i32
    return %c0_i32, %c0_i32_0 : i32, i32
  }
  func.func @transform_4(%arg0: i32) -> (i32, i32) {
    %c0_i32 = arith.constant 0 : i32
    %c0_i32_0 = arith.constant 0 : i32
    return %arg0, %c0_i32 : i32, i32
  }
  func.func @transform_5(%arg0: i32) -> (i32, i32, i32) {
    %c0_i32 = arith.constant 0 : i32
    %c0_i32_0 = arith.constant 0 : i32
    %c0_i32_1 = arith.constant 0 : i32
    return %arg0, %c0_i32, %c0_i32_0 : i32, i32, i32
  }
}

module attributes {stable_mosaic.version = 11 : i64} {
  func.func @_affine_relu_kernel(%arg0: i32, %arg1: memref<32x128xf32, #tpu.memory_space<vmem>>, %arg2: memref<1x128xf32, #tpu.memory_space<vmem>>, %arg3: memref<1x128xf32, #tpu.memory_space<vmem>>, %arg4: memref<32x128xf32, #tpu.memory_space<vmem>>) attributes {dimension_semantics = [#tpu.dimension_semantics<parallel>], iteration_bounds = array<i64: 1>, scalar_prefetch = 0 : i64, scratch_operands = 0 : i64, tpu.core_type = #tpu.core_type<tc>, window_params = [{transform_indices = @transform_0, window_bounds = array<i64: 32, 128>}, {pipeline_mode = #tpu.pipeline_mode<synchronous>, transform_indices = @transform_1, window_bounds = array<i64: 1, 128>}, {pipeline_mode = #tpu.pipeline_mode<synchronous>, transform_indices = @transform_2, window_bounds = array<i64: 1, 128>}, {transform_indices = @transform_3, window_bounds = array<i64: 32, 128>}]} {
    %c0 = arith.constant 0 : index
    %c0_0 = arith.constant 0 : index
    %0 = vector.load %arg1[%c0, %c0_0] : memref<32x128xf32, #tpu.memory_space<vmem>>, vector<32x128xf32>
    %c0_1 = arith.constant 0 : index
    %c0_2 = arith.constant 0 : index
    %1 = vector.load %arg2[%c0_1, %c0_2] : memref<1x128xf32, #tpu.memory_space<vmem>>, vector<1x128xf32>
    %2 = vector.broadcast %1 : vector<1x128xf32> to vector<32x128xf32>
    %3 = arith.mulf %0, %2 : vector<32x128xf32>
    %c0_3 = arith.constant 0 : index
    %c0_4 = arith.constant 0 : index
    %4 = vector.load %arg3[%c0_3, %c0_4] : memref<1x128xf32, #tpu.memory_space<vmem>>, vector<1x128xf32>
    %5 = vector.broadcast %4 : vector<1x128xf32> to vector<32x128xf32>
    %6 = arith.addf %3, %5 : vector<32x128xf32>
    %cst = arith.constant 0.000000e+00 : f32
    %7 = vector.broadcast %cst : f32 to vector<32x128xf32>
    %8 = arith.maximumf %6, %7 : vector<32x128xf32>
    %c0_5 = arith.constant 0 : index
    %c0_6 = arith.constant 0 : index
    %9 = vector.load %arg4[%c0_5, %c0_6] : memref<32x128xf32, #tpu.memory_space<vmem>>, vector<32x128xf32>
    tpu.vector_store %arg4[%c0_5, %c0_6], %8 {strides = array<i32>} : memref<32x128xf32, #tpu.memory_space<vmem>>, vector<32x128xf32>,
    return
  }
  func.func @transform_0(%arg0: i32) -> (i32, i32) {
    %c0_i32 = arith.constant 0 : i32
    %c0_i32_0 = arith.constant 0 : i32
    return %arg0, %c0_i32 : i32, i32
  }
  func.func @transform_1(%arg0: i32) -> (i32, i32) {
    %c0_i32 = arith.constant 0 : i32
    %c0_i32_0 = arith.constant 0 : i32
    %c0_i32_1 = arith.constant 0 : i32
    return %c0_i32, %c0_i32_0 : i32, i32
  }
  func.func @transform_2(%arg0: i32) -> (i32, i32) {
    %c0_i32 = arith.constant 0 : i32
    %c0_i32_0 = arith.constant 0 : i32
    %c0_i32_1 = arith.constant 0 : i32
    return %c0_i32, %c0_i32_0 : i32, i32
  }
  func.func @transform_3(%arg0: i32) -> (i32, i32) {
    %c0_i32 = arith.constant 0 : i32
    %c0_i32_0 = arith.constant 0 : i32
    return %arg0, %c0_i32 : i32, i32
  }
}

</mosaic_0001>

<bundles_post_ra>
// kernel: tile.28
= control target key start
LH: loop header
LB: loop body
LE: loop exit
PB: predicated region body
PF: predicated region fallthrough
CT: control target
= control target key end

     0   :  { %s28_s0 = inlined_call_operand.vmem [shape: f32[8], index: 0, kind: input, shape index: {}]   ;;  %s29_s1 = inlined_call_operand.vmem [shape: f32[16,8], index: 1, kind: output, shape index: {}]  }
   0x1   :  { %v4_v0 = vld [vmem:[%s28_s0] ss:$0 sm:$0xff] }
   0x2   :  { %5 = vst [vmem:[%s29_s1] sm:$0xff] %v4_v0 }
   0x3   :  { %8 = vst [vmem:[%s29_s1 + $0x8] sm:$0xff] %v4_v0 }

// kernel: tile.29
= control target key start
LH: loop header
LB: loop body
LE: loop exit
PB: predicated region body
PF: predicated region fallthrough
CT: control target
= control target key end

     0   :  { %s131_s10 = smov 120   ;;  %s132_s11 = smov 104   ;;  %vm3_vm0 = vcmask 64512   ;;  %vm9_vm1 = vcmask 1048512   ;;  %vm15_vm2 = vcmask 982912   ;;  %vm21_vm3 = vcmask 917312   ;;  %s207_s0 = inlined_call_operand.vmem [shape: f32[16,8], index: 0, kind: input, shape index: {}]   ;;  %s208_s1 = inlined_call_operand.vmem [shape: f32[1,128], index: 1, kind: output, shape index: {}]  }
   0x1   :  { %v101_v0 = vld [vmem:[%s207_s0 + $0xf] sm:$0x1]   ;;  %v103_v1 = vld [vmem:[%s207_s0 + $0xd] sm:$0x1]   ;;  %v105_v2 = vld [vmem:[%s207_s0 + $0xb] sm:$0x1]  }
   0x2   :  { %7 = vrot.lane.b32.xlu0 %v101_v0, %s131_s10  ;;  %19 = vrot.lane.b32.xlu1 %v103_v1, %s132_s11  ;;  %s133_s14 = smov 88   ;;  %v102_v3 = vld [vmem:[%s207_s0 + $0xe] sm:$0x1]   ;;  %v104_v4 = vld [vmem:[%s207_s0 + $0xc] sm:$0x1]   ;;  %s134_s19 = smov 112  }
   0x3   :  { %31 = vrot.lane.b32.xlu2 %v105_v2, %s133_s14  ;;  %s135_s20 = smov 96   ;;  %v106_v5 = vld [vmem:[%s207_s0 + $0xa] sm:$0x1]   ;;  %s136_s23 = smov 80   ;;  %v107_v6 = vld [vmem:[%s207_s0 + $0x9] sm:$0x1]  }
   0x4   :  { %v108_v7 = vld [vmem:[%s207_s0 + $0x8] sm:$0x1]   ;;  %s137_s28 = smov 72   ;;  %s138_s29 = smov 64   ;;  %v109_v8 = vld [vmem:[%s207_s0 + $0x7] sm:$0x1]  }
   0x5   :  { %s139_s3 = smov 56   ;;  %v110_v9 = vld [vmem:[%s207_s0 + $0x6] sm:$0x1]   ;;  %v111_v10 = vld [vmem:[%s207_s0 + $0x5] sm:$0x1]   ;;  %s140_s8 = smov 48  }
   0x6   :  { %s141_s9 = smov 40   ;;  %v112_v11 = vld [vmem:[%s207_s0 + $0x4] sm:$0x1]   ;;  %s142_s12 = smov 32   ;;  %v113_v12 = vld [vmem:[%s207_s0 + $0x3] sm:$0x1]  }
   0x7   :  { %v114_v13 = vld [vmem:[%s207_s0 + $0x2] sm:$0x1]   ;;  %s143_s17 = smov 24   ;;  %s144_s18 = smov 16   ;;  %v115_v14 = vld [vmem:[%s207_s0 + $0x1] sm:$0x1]  }
   0x8   :  { %s145_s21 = smov 8   ;;  %v2_v15 = vld [vmem:[%s207_s0] sm:$0x1]   ;;  %vm27_vm4 = vcmask 851712   ;;  %vm33_vm5 = vcmask 786112   ;;  %vm39_vm6 = vcmask 720512  }
   0x9   :  { %4 = vst.msk [vmem:[#allocation0] sm:$0x1] %vm3_vm0, %v2_v15   ;;  %vm45_vm7 = vcmask 654912   ;;  %vm51_vm8 = vcmask 589312   ;;  %vm57_vm9 = vcmask 523712   ;;  %vm63_vm10 = vcmask 458112  }
   0xa   :  { %13 = vrot.lane.b32.xlu0 %v102_v3, %s134_s19  ;;  %25 = vrot.lane.b32.xlu1 %v104_v4, %s135_s20  ;;  %vm69_vm11 = vcmask 392512   ;;  %vm75_vm12 = vcmask 326912   ;;  %vm81_vm13 = vcmask 261312   ;;  %vm87_vm14 = vcmask 195712  }
   0xb   :  { %37 = vrot.lane.b32.xlu2 %v106_v5, %s136_s23  ;;  %vm93_vm15 = vcmask 130112  }
  0x12   :  { %43 = vrot.lane.b32.xlu0 %v107_v6, %s137_s28  ;;  %49 = vrot.lane.b32.xlu1 %v108_v7, %s138_s29 }
  0x13   :  { %55 = vrot.lane.b32.xlu2 %v109_v8, %s139_s3 }
  0x1a   :  { %61 = vrot.lane.b32.xlu0 %v110_v9, %s140_s8  ;;  %67 = vrot.lane.b32.xlu1 %v111_v10, %s141_s9 }
  0x1b   :  { %73 = vrot.lane.b32.xlu2 %v112_v11, %s142_s12 }
  0x22   :  { %79 = vrot.lane.b32.xlu0 %v113_v12, %s143_s17  ;;  %85 = vrot.lane.b32.xlu1 %v114_v13, %s144_s18 }
  0x23   :  { %91 = vrot.lane.b32.xlu2 %v115_v14, %s145_s21 }
  0x5d   :  { %v32_v16 = vpop.permute.xlu2 %31  }
  0x65   :  { %v38_v17 = vpop.permute.xlu2 %37  }
  0x6d   :  { %v56_v18 = vpop.permute.xlu2 %55  }
  0x74   :  { %v8_v19 = vpop.permute.xlu0 %7   ;;  %v20_v20 = vpop.permute.xlu1 %19  }
  0x75   :  { %10 = vst.msk [vmem:[#allocation0] sm:$0x1] %vm9_vm1, %v8_v19   ;;  %v74_v21 = vpop.permute.xlu2 %73  }
  0x7c   :  { %v14_v22 = vpop.permute.xlu0 %13   ;;  %v26_v23 = vpop.permute.xlu1 %25  }
  0x7d   :  { %16 = vst.msk [vmem:[#allocation0] sm:$0x1] %vm15_vm2, %v14_v22   ;;  %v92_v24 = vpop.permute.xlu2 %91  }
  0x7e   :  { %22 = vst.msk [vmem:[#allocation0] sm:$0x1] %vm21_vm3, %v20_v20  }
  0x7f   :  { %28 = vst.msk [vmem:[#allocation0] sm:$0x1] %vm27_vm4, %v26_v23  }
  0x80   :  { %34 = vst.msk [vmem:[#allocation0] sm:$0x1] %vm33_vm5, %v32_v16  }
  0x81   :  { %40 = vst.msk [vmem:[#allocation0] sm:$0x1] %vm39_vm6, %v38_v17  }
  0x84   :  { %v44_v25 = vpop.permute.xlu0 %43   ;;  %v50_v26 = vpop.permute.xlu1 %49  }
  0x85   :  { %46 = vst.msk [vmem:[#allocation0] sm:$0x1] %vm45_vm7, %v44_v25  }
  0x86   :  { %52 = vst.msk [vmem:[#allocation0] sm:$0x1] %vm51_vm8, %v50_v26  }
  0x87   :  { %58 = vst.msk [vmem:[#allocation0] sm:$0x1] %vm57_vm9, %v56_v18  }
  0x8c   :  { %v62_v27 = vpop.permute.xlu0 %61   ;;  %v68_v28 = vpop.permute.xlu1 %67  }
  0x8d   :  { %64 = vst.msk [vmem:[#allocation0] sm:$0x1] %vm63_vm10, %v62_v27  }
  0x8e   :  { %70 = vst.msk [vmem:[#allocation0] sm:$0x1] %vm69_vm11, %v68_v28  }
  0x8f   :  { %76 = vst.msk [vmem:[#allocation0] sm:$0x1] %vm75_vm12, %v74_v21  }
  0x94   :  { %v80_v29 = vpop.permute.xlu0 %79   ;;  %v86_v30 = vpop.permute.xlu1 %85  }
  0x95   :  { %82 = vst.msk [vmem:[#allocation0] sm:$0x1] %vm81_vm13, %v80_v29  }
  0x96   :  { %88 = vst.msk [vmem:[#allocation0] sm:$0x1] %vm87_vm14, %v86_v30  }
  0x97   :  { %94 = vst.msk [vmem:[#allocation0] sm:$0x1] %vm93_vm15, %v92_v24  }
  0x9e   :  { %v97_v31 = vld [vmem:[#allocation0] sm:$0x1] }
  0x9f   :  { %100 = vst [vmem:[%s208_s1] sm:$0x1] %v97_v31 }

// kernel: double_conv.3
= control target key start
LH: loop header
LB: loop body
LE: loop exit
PB: predicated region body
PF: predicated region fallthrough
CT: control target
= control target key end

     0   :  { %9 = vsyncpa [#allocation4], 0  ;;  %s565_s12 = smov 0   ;;  %s609_s0 = inlined_call_operand.vmem [shape: f32[32,64], index: 0, kind: input, shape index: {}]   ;;  %s610_s1 = inlined_call_operand.hbm [shape: f32[192,128], index: 1, kind: input, shape index: {}]   ;;  %s611_s2 = inlined_call_operand.vmem [shape: f32[32,128], index: 2, kind: output, shape index: {0}]   ;;  %s612_s3 = inlined_call_operand.vmem [shape: f32[2,2,128], index: 3, kind: output, shape index: {1}]  }
   0x1 LB: > { %s130_s15 = sshll.u32 %s610_s1, 4  ;;  %s574_s16 = sadd.s32 4294967295, %s539_s12   ;;  %s539_s12 = sphi %s565_s12, %s15_s12   ;;  %s131_s15 = int_to_ptr.hbm [resolvable:$true] %s130_s15 }
   0x2   : > { %p451_p0 = scmp.ge.s32.totalorder %s539_s12, 1  ;;  %p119_p1 = scmp.lt.s32.totalorder %s539_s12, 3 }
   0x3   : > { %p485_p2 = scmp.eq.s32.totalorder %s574_s16, 0  ;;  %s541_s17 = smov [#allocation3]  }
   0x4   : > { %p120_p3 = pnand %p451_p0, %p119_p1  ;;  %s132_s18 = sshll.u32 %s541_s17, 4  ;;  %s133_s18 = int_to_ptr.vmem [resolvable:$true] %s132_s18 }
   0x5   : > { %s542_s19 = smov 128   ;;  %s543_s20 = smov 8  }
   0x6   : > { %p481_p4 = pneg %p120_p3  ;;  %157 = sbr.rel (%p120_p3) target bundleno = 189 (0xbd), region = 28 }
   0x8   : > { %p482_p5 = pnand %p485_p2, %p481_p4 }
   0xa   : > { %484 = dma.hbm_to_vmem [thread:$0]  (!%p482_p5), %s131_s15, 3072, %s133_s18, [#allocation4], %s542_s19, %s542_s19, %s543_s20  }
   0xb   : > { %534 = dma.done.wait (%p485_p2), [#allocation4], 3072  }
   0xc   : > { %536 = vsyncadd (%p485_p2), [#allocation4], 4294964224  ;;  %s456_s21 = sshll.u32 %s574_s16, 1  ;;  %vm204_vm0 = vcmask 516096   ;;  %v544_v0 = vmov 0.0   ;;  %v297_v1 = vld [vmem:[#allocation3 + $0xb8] sm:$0xff] }
   0xd   : > { %p187_p6 = scmp.lt.s32.totalorder %s456_s21, 3  ;;  %205 = vst.msk [vmem:[#allocation2] sm:$0x1] %vm204_vm0, %v544_v0  ;;  %v296_v2 = vld [vmem:[#allocation3 + $0xb0] sm:$0xff]  ;;  %v229_v3 = vld [vmem:[#allocation3 + $0x78] sm:$0xff]  ;;  %312 = vmatpush.msra.mxu2 %v297_v1  ;;  %v295_v6 = vld [vmem:[#allocation3 + $0xa8] sm:$0xff] }
   0xe   : > { %206 = vst.msk [vmem:[#allocation2 + $0x11] sm:$0x1] %vm204_vm0, %v544_v0  ;;  %244 = vmatpush.msra.mxu0 %v229_v3  ;;  %v219_v4 = vld [vmem:[#allocation3 + $0x38] sm:$0xff]  ;;  %v228_v5 = vld [vmem:[#allocation3 + $0x70] sm:$0xff]  ;;  %469 = vmatpush.msra.mxu3 %v229_v3  ;;  %v227_v8 = vld [vmem:[#allocation3 + $0x68] sm:$0xff]  ;;  %vm207_vm1 = vcmask 523264  }
   0xf   : > { %s614_s21 = smov (!%p187_p6, %s456_s21), 3  ;;  %273 = vmatpush.msra.mxu1 %v219_v4  ;;  %v218_v7 = vld [vmem:[#allocation3 + $0x30] sm:$0xff]  ;;  %313 = vmatpush.msra.mxu2 %v296_v2  ;;  %v217_v9 = vld [vmem:[#allocation3 + $0x28] sm:$0xff]  ;;  %v294_v10 = vld [vmem:[#allocation3 + $0xa0] sm:$0xff]  ;;  %p198_p7 = scmp.lt.s32.totalorder %s574_s16, 1  ;;  %vm345_vm2 = vcmask 1040384  }
  0x10   : > { %s457_s22 = sshll.u32 %s614_s21, 3  ;;  %245 = vmatpush.msra.mxu0 %v228_v5  ;;  %470 = vmatpush.msra.mxu3 %v228_v5  ;;  %v226_v11 = vld [vmem:[#allocation3 + $0x60] sm:$0xff]  ;;  %v293_v13 = vld [vmem:[#allocation3 + $0x98] sm:$0xff]  ;;  %v292_v18 = vld [vmem:[#allocation3 + $0x90] sm:$0xff] }
  0x11   : > { %s190_s25 = scalar_lea.vmem %s609_s0, %s457_s22  ;;  %274 = vmatpush.msra.mxu1 %v218_v7  ;;  %314 = vmatpush.msra.mxu2 %v295_v6  ;;  %v216_v12 = vld [vmem:[#allocation3 + $0x20] sm:$0xff]  ;;  %v225_v14 = vld [vmem:[#allocation3 + $0x58] sm:$0xff]  ;;  %v224_v19 = vld [vmem:[#allocation3 + $0x50] sm:$0xff]  ;;  %s196_s28 = scalar_lea.vmem %s611_s2, %s457_s22 }
  0x12   : > { %246 = vmatpush.msra.mxu0 %v227_v8  ;;  %471 = vmatpush.msra.mxu3 %v227_v8  ;;  %v202_v15 = vld [vmem:[%s190_s25] sm:$0xff]  ;;  %v215_v16 = vld [vmem:[#allocation3 + $0x18] sm:$0xff]  ;;  %v203_v17 = vld [vmem:[%s190_s25 + $0x8] sm:$0xff]  ;;  %s616_s16 = smov (!%p198_p7, %s574_s16), 1 }
  0x13   : > { %275 = vmatpush.msra.mxu1 %v217_v9  ;;  %315 = vmatpush.msra.mxu2 %v294_v10  ;;  %208 = vst.msk [vmem:[#allocation2 + $0x1] sm:$0xff] %vm207_vm1, %v202_v15  ;;  %v214_v20 = vld [vmem:[#allocation3 + $0x10] sm:$0xff]  ;;  %v291_v21 = vld [vmem:[#allocation3 + $0x88] sm:$0xff]  ;;  %v290_v24 = vld [vmem:[#allocation3 + $0x80] sm:$0xff]  ;;  %s460_s29 = sshll.u32 %s616_s16, 1 }
  0x14   : > { %247 = vmatpush.msra.mxu0 %v226_v11  ;;  %472 = vmatpush.msra.mxu3 %v226_v11  ;;  %209 = vst.msk [vmem:[#allocation2 + $0x9] sm:$0xff] %vm207_vm1, %v203_v17  ;;  %v223_v22 = vld [vmem:[#allocation3 + $0x48] sm:$0xff]  ;;  %v222_v25 = vld [vmem:[#allocation3 + $0x40] sm:$0xff]  ;;  %s201_s5 = scalar_lea.vmem %s612_s3, %s460_s29 }
  0x15   : > { %276 = vmatpush.msra.mxu1 %v216_v12  ;;  %316 = vmatpush.msra.mxu2 %v293_v13  ;;  %v213_v23 = vld [vmem:[#allocation3 + $0x8] sm:$0xff]  ;;  %v212_v26 = vld [vmem:[#allocation3] sm:$0xff] }
  0x16   : > { %248 = vmatpush.msra.mxu0 %v225_v14  ;;  %473 = vmatpush.msra.mxu3 %v225_v14 }
  0x17   : > { %277 = vmatpush.msra.mxu1 %v215_v16  ;;  %317 = vmatpush.msra.mxu2 %v292_v18 }
  0x18   : > { %249 = vmatpush.msra.mxu0 %v224_v19  ;;  %474 = vmatpush.msra.mxu3 %v224_v19 }
  0x19   : > { %278 = vmatpush.msra.mxu1 %v214_v20  ;;  %318 = vmatpush.msra.mxu2 %v291_v21 }
  0x1a   : > { %250 = vmatpush.msra.mxu0 %v223_v22  ;;  %475 = vmatpush.msra.mxu3 %v223_v22  ;;  %v220_v27 = vld [vmem:[#allocation2 + $0x1] sm:$0xff] }
  0x1b   : > { %279 = vmatpush.msra.mxu1 %v213_v23  ;;  %v210_v28 = vld [vmem:[#allocation2] sm:$0xff]  ;;  %319 = vmatpush.msra.mxu2 %v290_v24  ;;  %v221_v30 = vld [vmem:[#allocation2 + $0x9] sm:$0xff] }
  0x1c   : > { %v288_v29 = vld [vmem:[#allocation2 + $0x2] sm:$0xff]  ;;  %251 = vmatpush.msra.mxu0 %v222_v25  ;;  %476 = vmatpush.msra.mxu3 %v222_v25  ;;  %v289_v31 = vld [vmem:[#allocation2 + $0xa] sm:$0xff] }
  0x1d   : > { %465 = vmatmul.msk.f32.vlgmr.msra.gmra.mxu2 %vm207_vm1, %v288_v29  ;;  %280 = vmatpush.msra.mxu1 %v212_v26  ;;  %v211_v32 = vld [vmem:[#allocation2 + $0x8] sm:$0xff] }
  0x1e   : > { %461 = vmatmul.msk.f32.vlgmr.msra.gmra.mxu0 %vm207_vm1, %v220_v27  ;;  %463 = vmatmul.msk.f32.vlgmr.msra.gmra.mxu1 %vm207_vm1, %v210_v28 }
  0x1f   : > { %462 = vmatmul.msk.f32.vlgmr.msra.gmra.mxu3 %vm207_vm1, %v221_v30 }
  0x25   : > { %466 = vmatmul.msk.f32.gmra.mxu2 %vm207_vm1, %v289_v31 }
  0x26   : > { %464 = vmatmul.msk.f32.gmra.mxu1 %vm207_vm1, %v211_v32 }
  0x9b   : > { %v253_v33 = vpop.f32.mrf.mxu0  ;;  %v282_v34 = vpop.f32.mrf.mxu1 }
  0x9c   : > { %v283_v35 = vadd.f32 %v282_v34, %v253_v33 }
  0xa0   : > { %v321_v36 = vpop.f32.mrf.mxu2 }
  0xa1   : > { %v327_v37 = vadd.f32 %v321_v36, %v283_v35 }
  0xa2   : > { %v256_v38 = vpop.f32.mrf.mxu3 }
  0xa3   : > { %348 = vst [vmem:[%s196_s28] sm:$0xff] %v327_v37  ;;  %v285_v39 = vpop.f32.mrf.mxu1  ;;  %v336_v43 = vmul.f32 %v327_v37, %v327_v37 }
  0xa4   : > { %v286_v40 = vadd.f32 %v285_v39, %v256_v38 }
  0xa8   : > { %v324_v41 = vpop.f32.mrf.mxu2 }
  0xa9   : > { %v328_v42 = vadd.f32 %v324_v41, %v286_v40 }
  0xab   : > { %v329_v44 = vadd.f32 %v328_v42, %v327_v37  ;;  %v337_v45 = vmul.f32 %v328_v42, %v328_v42  ;;  %349 = vst [vmem:[%s196_s28 + $0x8] sm:$0xff] %v328_v42 }
  0xad   : > { %v330_v46 = vrot.slane %v329_v44, 4  ;;  %v338_v47 = vadd.f32 %v337_v45, %v336_v43 }
  0xaf   : > { %v331_v48 = vadd.f32 %v330_v46, %v329_v44  ;;  %v339_v49 = vrot.slane %v338_v47, 4 }
  0xb1   : > { %v332_v50 = vrot.slane %v331_v48, 2  ;;  %v340_v51 = vadd.f32 %v339_v49, %v338_v47 }
  0xb3   : > { %v333_v52 = vadd.f32 %v332_v50, %v331_v48  ;;  %v341_v53 = vrot.slane %v340_v51, 2 }
  0xb5   : > { %v334_v54 = vrot.slane %v333_v52, 1  ;;  %v342_v55 = vadd.f32 %v341_v53, %v340_v51 }
  0xb7   : > { %v343_v56 = vrot.slane %v342_v55, 1  ;;  %v335_v57 = vadd.f32 %v334_v54, %v333_v52 }
  0xb9   : > { %v344_v58 = vadd.f32 %v343_v56, %v342_v55 }
  0xbb   : > { %v346_v59 = vsel %vm345_vm2, %v335_v57, %v344_v58 }
  0xbc   : > { %347 = vst [vmem:[%s201_s5] sm:$0x3] %v346_v59 }
  0xbd PF: > { %s15_s12 = sadd.s32 1, %s539_s12  }
  0xbe   : > { %p12_p8 = scmp.ge.s32.totalorder %s15_s12, 4  }
  0xc0   :  { %14 = sbr.rel (!%p12_p8) target bundleno = 1 (0x1), region = 75 }
  0xc5   :  { %386 = vsyncpa [#allocation4], 1 }
  0xc6   :  { %388 = vsyncpa [#allocation4 + $0x1], 1 }

// kernel: double_conv.5
= control target key start
LH: loop header
LB: loop body
LE: loop exit
PB: predicated region body
PF: predicated region fallthrough
CT: control target
= control target key end

     0   :  { %s98_s0 = inlined_call_operand.vmem [shape: f32[32,128], index: 0, kind: input, shape index: {}]   ;;  %s99_s1 = inlined_call_operand.vmem [shape: f32[1,128], index: 1, kind: input, shape index: {}]   ;;  %s100_s2 = inlined_call_operand.vmem [shape: f32[1,128], index: 2, kind: input, shape index: {}]   ;;  %s101_s3 = inlined_call_operand.vmem [shape: f32[32,128], index: 3, kind: output, shape index: {}]  }
   0x1   :  { %v14_v0 = vld [vmem:[%s98_s0] sm:$0xff]  ;;  %v15_v3 = vld [vmem:[%s98_s0 + $0x8] sm:$0xff]  ;;  %v16_v6 = vld [vmem:[%s98_s0 + $0x10] sm:$0xff] }
   0x2   :  { %v46_v1 = vld [vmem:[%s99_s1] ss:$0 sm:$0xff]  ;;  %v17_v7 = vld [vmem:[%s98_s0 + $0x18] sm:$0xff] }
   0x3   :  { %v47_v2 = vld [vmem:[%s100_s2] ss:$0 sm:$0xff]  ;;  %v22_v4 = vmul.f32 %v46_v1, %v14_v0  ;;  %v23_v5 = vmul.f32 %v46_v1, %v15_v3  ;;  %v24_v8 = vmul.f32 %v46_v1, %v16_v6  ;;  %v25_v9 = vmul.f32 %v46_v1, %v17_v7 }
   0x5   :  { %v30_v10 = vadd.f32 %v47_v2, %v22_v4  ;;  %v31_v11 = vadd.f32 %v47_v2, %v23_v5  ;;  %v32_v12 = vadd.f32 %v47_v2, %v24_v8  ;;  %v33_v13 = vadd.f32 %v47_v2, %v25_v9 }
   0x7   :  { %v34_v14 = vmax.f32 %v30_v10, 0.0  ;;  %v35_v15 = vmax.f32 %v31_v11, 0.0  ;;  %v36_v16 = vmax.f32 %v32_v12, 0.0  ;;  %v37_v17 = vmax.f32 %v33_v13, 0.0 }
   0x9   :  { %38 = vst [vmem:[%s101_s3] sm:$0xff] %v34_v14 }
   0xa   :  { %39 = vst [vmem:[%s101_s3 + $0x8] sm:$0xff] %v35_v15 }
   0xb   :  { %40 = vst [vmem:[%s101_s3 + $0x10] sm:$0xff] %v36_v16 }
   0xc   :  { %41 = vst [vmem:[%s101_s3 + $0x18] sm:$0xff] %v37_v17 }

// kernel: double_conv.4
= control target key start
LH: loop header
LB: loop body
LE: loop exit
PB: predicated region body
PF: predicated region fallthrough
CT: control target
= control target key end

     0   :  { %s570_s18 = smov 0   ;;  %s758_s0 = inlined_call_operand.vmem [shape: f32[32,128], index: 0, kind: input, shape index: {}]   ;;  %s759_s1 = inlined_call_operand.vmem [shape: f32[384,128], index: 1, kind: input, shape index: {}]   ;;  %s760_s2 = inlined_call_operand.vmem [shape: f32[1,128], index: 2, kind: input, shape index: {}]   ;;  %s761_s3 = inlined_call_operand.vmem [shape: f32[1,128], index: 3, kind: input, shape index: {}]   ;;  %s762_s4 = inlined_call_operand.vmem [shape: f32[32,128], index: 4, kind: output, shape index: {0}]   ;;  %s763_s5 = inlined_call_operand.vmem [shape: f32[2,2,128], index: 5, kind: output, shape index: {1}]  }
   0x1 LB: > { %s576_s19 = sadd.s32 4294967295, %s537_s18   ;;  %p496_p0 = scmp.ge.s32.totalorder %s537_s18, 1  ;;  %s537_s18 = sphi %s570_s18, %s16_s18  }
   0x2   : > { %p191_p1 = scmp.lt.s32.totalorder %s537_s18, 3 }
   0x4   : > { %p192_p2 = pnand %p496_p0, %p191_p1 }
   0x5   : > { %s497_s26 = sshll.u32 (!%p192_p2), %s576_s19, 1  ;;  %p235_p4 = scmp.lt.s32.totalorder (!%p192_p2), %s576_s19, 1 }
   0x6   : > { %195 = sbr.rel (%p192_p2) target bundleno = 203 (0xcb), region = 36  ;;  %p596_p3 = scmp.lt.s32.totalorder (!%p192_p2), %s497_s26, 3 }
   0xb   : > { %v358_v0 = vld [vmem:[%s759_s1 + $0x178] sm:$0xff]  ;;  %v357_v1 = vld [vmem:[%s759_s1 + $0x170] sm:$0xff]  ;;  %v539_v5 = vmov 0.0   ;;  %v356_v6 = vld [vmem:[%s759_s1 + $0x168] sm:$0xff]  ;;  %s766_s26 = smov (!%p596_p3, %s497_s26), 3  ;;  %s768_s19 = smov (!%p235_p4, %s576_s19), 1 }
   0xc   : > { %v294_v2 = vld [vmem:[%s759_s1 + $0xf8] sm:$0xff]  ;;  %359 = vmatpush.msra.mxu2 %v358_v0  ;;  %v293_v4 = vld [vmem:[%s759_s1 + $0xf0] sm:$0xff]  ;;  %255 = vst [vmem:[#allocation2] sm:$0x1] %v539_v5  ;;  %v292_v8 = vld [vmem:[%s759_s1 + $0xe8] sm:$0xff]  ;;  %s498_s9 = sshll.u32 %s766_s26, 3 }
   0xd   : > { %295 = vmatpush.msra.mxu0 %v294_v2  ;;  %v276_v3 = vld [vmem:[%s759_s1 + $0x78] sm:$0xff]  ;;  %504 = vmatpush.msra.mxu3 %v294_v2  ;;  %v275_v7 = vld [vmem:[%s759_s1 + $0x70] sm:$0xff]  ;;  %256 = vst [vmem:[#allocation2 + $0x11] sm:$0x1] %v539_v5  ;;  %v274_v9 = vld [vmem:[%s759_s1 + $0x68] sm:$0xff]  ;;  %s227_s22 = scalar_lea.vmem %s758_s0, %s498_s9  ;;  %s233_s20 = scalar_lea.vmem %s762_s4, %s498_s9  ;;  %vm400_vm0 = vcmask 1040384  }
   0xe   : > { %318 = vmatpush.msra.mxu1 %v276_v3  ;;  %360 = vmatpush.msra.mxu2 %v357_v1  ;;  %v355_v10 = vld [vmem:[%s759_s1 + $0x160] sm:$0xff]  ;;  %v354_v13 = vld [vmem:[%s759_s1 + $0x158] sm:$0xff]  ;;  %v353_v16 = vld [vmem:[%s759_s1 + $0x150] sm:$0xff]  ;;  %s501_s26 = sshll.u32 %s768_s19, 1 }
   0xf   : > { %296 = vmatpush.msra.mxu0 %v293_v4  ;;  %505 = vmatpush.msra.mxu3 %v293_v4  ;;  %v291_v11 = vld [vmem:[%s759_s1 + $0xe0] sm:$0xff]  ;;  %v290_v14 = vld [vmem:[%s759_s1 + $0xd8] sm:$0xff]  ;;  %v289_v17 = vld [vmem:[%s759_s1 + $0xd0] sm:$0xff]  ;;  %s238_s23 = scalar_lea.vmem %s763_s5, %s501_s26 }
  0x10   : > { %319 = vmatpush.msra.mxu1 %v275_v7  ;;  %361 = vmatpush.msra.mxu2 %v356_v6  ;;  %v273_v12 = vld [vmem:[%s759_s1 + $0x60] sm:$0xff]  ;;  %v272_v15 = vld [vmem:[%s759_s1 + $0x58] sm:$0xff]  ;;  %v271_v18 = vld [vmem:[%s759_s1 + $0x50] sm:$0xff] }
  0x11   : > { %297 = vmatpush.msra.mxu0 %v292_v8  ;;  %506 = vmatpush.msra.mxu3 %v292_v8  ;;  %v352_v19 = vld [vmem:[%s759_s1 + $0x148] sm:$0xff]  ;;  %v351_v22 = vld [vmem:[%s759_s1 + $0x140] sm:$0xff]  ;;  %v350_v24 = vld [vmem:[%s759_s1 + $0x138] sm:$0xff] }
  0x12   : > { %320 = vmatpush.msra.mxu1 %v274_v9  ;;  %362 = vmatpush.msra.mxu2 %v355_v10  ;;  %v288_v20 = vld [vmem:[%s759_s1 + $0xc8] sm:$0xff]  ;;  %v287_v23 = vld [vmem:[%s759_s1 + $0xc0] sm:$0xff]  ;;  %v349_v26 = vld [vmem:[%s759_s1 + $0x130] sm:$0xff] }
  0x13   : > { %298 = vmatpush.msra.mxu0 %v291_v11  ;;  %507 = vmatpush.msra.mxu3 %v291_v11  ;;  %v270_v21 = vld [vmem:[%s759_s1 + $0x48] sm:$0xff]  ;;  %v269_v25 = vld [vmem:[%s759_s1 + $0x40] sm:$0xff]  ;;  %v286_v27 = vld [vmem:[%s759_s1 + $0xb8] sm:$0xff] }
  0x14   : > { %321 = vmatpush.msra.mxu1 %v273_v12  ;;  %363 = vmatpush.msra.mxu2 %v354_v13  ;;  %v268_v28 = vld [vmem:[%s759_s1 + $0x38] sm:$0xff]  ;;  %v239_v29 = vld [vmem:[%s227_s22] sm:$0xff]  ;;  %v240_v30 = vld [vmem:[%s227_s22 + $0x8] sm:$0xff] }
  0x15   : > { %299 = vmatpush.msra.mxu0 %v290_v14  ;;  %508 = vmatpush.msra.mxu3 %v290_v14  ;;  %v529_v31 = vld [vmem:[%s760_s2] ss:$0 sm:$0xff]  ;;  %v285_v32 = vld [vmem:[%s759_s1 + $0xb0] sm:$0xff]  ;;  %v348_v37 = vld [vmem:[%s759_s1 + $0x128] sm:$0xff] }
  0x16   : > { %322 = vmatpush.msra.mxu1 %v272_v15  ;;  %364 = vmatpush.msra.mxu2 %v353_v16  ;;  %v530_v33 = vld [vmem:[%s761_s3] ss:$0 sm:$0xff]  ;;  %v267_v34 = vld [vmem:[%s759_s1 + $0x30] sm:$0xff]  ;;  %v245_v35 = vmul.f32 %v529_v31, %v239_v29  ;;  %v246_v36 = vmul.f32 %v529_v31, %v240_v30  ;;  %v284_v38 = vld [vmem:[%s759_s1 + $0xa8] sm:$0xff] }
  0x17   : > { %300 = vmatpush.msra.mxu0 %v289_v17  ;;  %509 = vmatpush.msra.mxu3 %v289_v17  ;;  %v266_v39 = vld [vmem:[%s759_s1 + $0x28] sm:$0xff]  ;;  %v347_v42 = vld [vmem:[%s759_s1 + $0x120] sm:$0xff]  ;;  %v346_v47 = vld [vmem:[%s759_s1 + $0x118] sm:$0xff] }
  0x18   : > { %323 = vmatpush.msra.mxu1 %v271_v18  ;;  %365 = vmatpush.msra.mxu2 %v352_v19  ;;  %v251_v40 = vadd.f32 %v530_v33, %v245_v35  ;;  %v252_v41 = vadd.f32 %v530_v33, %v246_v36  ;;  %v283_v43 = vld [vmem:[%s759_s1 + $0xa0] sm:$0xff]  ;;  %v282_v48 = vld [vmem:[%s759_s1 + $0x98] sm:$0xff]  ;;  %v345_v50 = vld [vmem:[%s759_s1 + $0x110] sm:$0xff] }
  0x19   : > { %301 = vmatpush.msra.mxu0 %v288_v20  ;;  %510 = vmatpush.msra.mxu3 %v288_v20  ;;  %v265_v44 = vld [vmem:[%s759_s1 + $0x20] sm:$0xff]  ;;  %v264_v49 = vld [vmem:[%s759_s1 + $0x18] sm:$0xff]  ;;  %v281_v51 = vld [vmem:[%s759_s1 + $0x90] sm:$0xff] }
  0x1a   : > { %324 = vmatpush.msra.mxu1 %v270_v21  ;;  %366 = vmatpush.msra.mxu2 %v351_v22  ;;  %v253_v45 = vmax.f32 %v251_v40, 0.0  ;;  %v254_v46 = vmax.f32 %v252_v41, 0.0  ;;  %v263_v52 = vld [vmem:[%s759_s1 + $0x10] sm:$0xff]  ;;  %v344_v53 = vld [vmem:[%s759_s1 + $0x108] sm:$0xff]  ;;  %v343_v56 = vld [vmem:[%s759_s1 + $0x100] sm:$0xff] }
  0x1b   : > { %302 = vmatpush.msra.mxu0 %v287_v23  ;;  %511 = vmatpush.msra.mxu3 %v287_v23  ;;  %v280_v54 = vld [vmem:[%s759_s1 + $0x88] sm:$0xff]  ;;  %v279_v57 = vld [vmem:[%s759_s1 + $0x80] sm:$0xff] }
  0x1c   : > { %325 = vmatpush.msra.mxu1 %v269_v25  ;;  %367 = vmatpush.msra.mxu2 %v350_v24  ;;  %257 = vst [vmem:[#allocation2 + $0x1] sm:$0xff] %v253_v45  ;;  %v262_v55 = vld [vmem:[%s759_s1 + $0x8] sm:$0xff]  ;;  %v261_v58 = vld [vmem:[%s759_s1] sm:$0xff] }
  0x1d   : > { %303 = vmatpush.msra.mxu0 %v286_v27  ;;  %512 = vmatpush.msra.mxu3 %v286_v27  ;;  %258 = vst [vmem:[#allocation2 + $0x9] sm:$0xff] %v254_v46 }
  0x1e   : > { %326 = vmatpush.msra.mxu1 %v268_v28  ;;  %368 = vmatpush.msra.mxu2 %v349_v26 }
  0x1f   : > { %304 = vmatpush.msra.mxu0 %v285_v32  ;;  %513 = vmatpush.msra.mxu3 %v285_v32 }
  0x20   : > { %327 = vmatpush.msra.mxu1 %v267_v34  ;;  %369 = vmatpush.msra.mxu2 %v348_v37 }
  0x21   : > { %305 = vmatpush.msra.mxu0 %v284_v38  ;;  %514 = vmatpush.msra.mxu3 %v284_v38 }
  0x22   : > { %328 = vmatpush.msra.mxu1 %v266_v39  ;;  %370 = vmatpush.msra.mxu2 %v347_v42 }
  0x23   : > { %306 = vmatpush.msra.mxu0 %v283_v43  ;;  %515 = vmatpush.msra.mxu3 %v283_v43  ;;  %v259_v59 = vld [vmem:[#allocation2] sm:$0xff] }
  0x24   : > { %329 = vmatpush.msra.mxu1 %v265_v44  ;;  %371 = vmatpush.msra.mxu2 %v346_v47  ;;  %v341_v60 = vld [vmem:[#allocation2 + $0x2] sm:$0xff]  ;;  %v342_v61 = vld [vmem:[#allocation2 + $0xa] sm:$0xff] }
  0x25   : > { %307 = vmatpush.msra.mxu0 %v282_v48  ;;  %516 = vmatpush.msra.mxu3 %v282_v48  ;;  %v260_v62 = vld [vmem:[#allocation2 + $0x8] sm:$0xff] }
  0x26   : > { %330 = vmatpush.msra.mxu1 %v264_v49  ;;  %372 = vmatpush.msra.mxu2 %v345_v50 }
  0x27   : > { %308 = vmatpush.msra.mxu0 %v281_v51  ;;  %517 = vmatpush.msra.mxu3 %v281_v51 }
  0x28   : > { %331 = vmatpush.msra.mxu1 %v263_v52  ;;  %373 = vmatpush.msra.mxu2 %v344_v53 }
  0x29   : > { %309 = vmatpush.msra.mxu0 %v280_v54  ;;  %518 = vmatpush.msra.mxu3 %v280_v54 }
  0x2a   : > { %332 = vmatpush.msra.mxu1 %v262_v55  ;;  %374 = vmatpush.msra.mxu2 %v343_v56 }
  0x2b   : > { %310 = vmatpush.msra.mxu0 %v279_v57  ;;  %375 = vmatmul.f32.vlgmr.msra.gmra.mxu2 %v341_v60 }
  0x2c   : > { %333 = vmatpush.msra.mxu1 %v261_v58  ;;  %311 = vmatmul.f32.vlgmr.msra.gmra.mxu0 %v253_v45 }
  0x2d   : > { %334 = vmatmul.f32.vlgmr.msra.gmra.mxu1 %v259_v59  ;;  %519 = vmatpush.msra.mxu3 %v279_v57 }
  0x2e   : > { %314 = vmatmul.f32.vlgmr.msra.gmra.mxu3 %v254_v46 }
  0x33   : > { %378 = vmatmul.f32.gmra.mxu2 %v342_v61 }
  0x35   : > { %337 = vmatmul.f32.gmra.mxu1 %v260_v62 }
  0xa9   : > { %v312_v63 = vpop.f32.mrf.mxu0 }
  0xaa   : > { %v335_v0 = vpop.f32.mrf.mxu1 }
  0xab   : > { %v336_v1 = vadd.f32 %v335_v0, %v312_v63 }
  0xae   : > { %v376_v2 = vpop.f32.mrf.mxu2 }
  0xaf   : > { %v382_v3 = vadd.f32 %v376_v2, %v336_v1 }
  0xb1   : > { %403 = vst [vmem:[%s233_s20] sm:$0xff] %v382_v3  ;;  %v315_v4 = vpop.f32.mrf.mxu3  ;;  %v391_v9 = vmul.f32 %v382_v3, %v382_v3 }
  0xb2   : > { %v338_v5 = vpop.f32.mrf.mxu1 }
  0xb3   : > { %v339_v6 = vadd.f32 %v338_v5, %v315_v4 }
  0xb6   : > { %v379_v7 = vpop.f32.mrf.mxu2 }
  0xb7   : > { %v383_v8 = vadd.f32 %v379_v7, %v339_v6 }
  0xb9   : > { %v384_v10 = vadd.f32 %v383_v8, %v382_v3  ;;  %v392_v11 = vmul.f32 %v383_v8, %v383_v8  ;;  %404 = vst [vmem:[%s233_s20 + $0x8] sm:$0xff] %v383_v8 }
  0xbb   : > { %v385_v12 = vrot.slane %v384_v10, 4  ;;  %v393_v13 = vadd.f32 %v392_v11, %v391_v9 }
  0xbd   : > { %v386_v14 = vadd.f32 %v385_v12, %v384_v10  ;;  %v394_v15 = vrot.slane %v393_v13, 4 }
  0xbf   : > { %v387_v16 = vrot.slane %v386_v14, 2  ;;  %v395_v17 = vadd.f32 %v394_v15, %v393_v13 }
  0xc1   : > { %v388_v18 = vadd.f32 %v387_v16, %v386_v14  ;;  %v396_v19 = vrot.slane %v395_v17, 2 }
  0xc3   : > { %v389_v20 = vrot.slane %v388_v18, 1  ;;  %v397_v21 = vadd.f32 %v396_v19, %v395_v17 }
  0xc5   : > { %v398_v22 = vrot.slane %v397_v21, 1  ;;  %v390_v23 = vadd.f32 %v389_v20, %v388_v18 }
  0xc7   : > { %v399_v24 = vadd.f32 %v398_v22, %v397_v21 }
  0xc9   : > { %v401_v25 = vsel %vm400_vm0, %v390_v23, %v399_v24 }
  0xca   : > { %402 = vst [vmem:[%s238_s23] sm:$0x3] %v401_v25 }
  0xcb PF: > { %s16_s18 = sadd.s32 1, %s537_s18  }
  0xcc   : > { %p13_p5 = scmp.ge.s32.totalorder %s16_s18, 4  }
  0xce   :  { %15 = sbr.rel (!%p13_p5) target bundleno = 1 (0x1), region = 78 }

</bundles_post_ra>
